<compile_context>
chip_gen: v7x
topology: tpu7x:2x2x1
jax: 0.10.0
libtpu: 0.0.40
codegen_flags: <defaults>
</compile_context>

<pallas_src>
import jax
import jax.numpy as jnp
from jax.experimental import pallas as pl
from jax.experimental.pallas import tpu as pltpu

_OUT_W = 128  # lane-dense padded output width (real q lives in column 0)


def _round_up(x, m):
    return ((x + m - 1) // m) * m


def qfunction_kernel(obs_ref, act_ref, w1o_ref, w1a_ref, b1_ref,
                     w2_ref, b2_ref, w3_ref, b3_ref, out_ref):
    obs = obs_ref[...]                                                # [TB, obs_dim]
    act = act_ref[...]                                                # [TB, act_dim]

    # Layer 1: split-weight Linear (== Linear on concat([obs, act])) + ReLU
    h1 = jnp.dot(obs, w1o_ref[...], preferred_element_type=jnp.float32)
    h1 = h1 + jnp.dot(act, w1a_ref[...], preferred_element_type=jnp.float32)
    h1 = jnp.maximum(h1 + b1_ref[...], 0.0)                          # [TB, H]

    # Layer 2: Linear + ReLU
    h2 = jnp.dot(h1, w2_ref[...], preferred_element_type=jnp.float32)
    h2 = jnp.maximum(h2 + b2_ref[...], 0.0)                          # [TB, H]

    # Layer 3: Linear with output padded to 128 lanes (only column 0 is real)
    q = jnp.dot(h2, w3_ref[...], preferred_element_type=jnp.float32)
    out_ref[...] = (q + b3_ref[...]).astype(out_ref.dtype)           # [TB, 128]


def qfunction_forward(obs, action, params, *, block_b=512):
    """Pallas-fused forward pass of QFunction.

    obs:    [B, obs_dim]    float32
    action: [B, action_dim] float32
    returns [B, 1]          float32
    """
    assert obs.shape[0] == action.shape[0]
    w1, b1, w2, b2, w3, b3 = params

    B = obs.shape[0]
    obs_dim = obs.shape[1]
    act_dim = action.shape[1]
    H = w1.shape[1]
    assert w1.shape[0] == obs_dim + act_dim

    # Split W1 so we never materialize concat([obs, action]) in HBM.
    w1_obs = w1[:obs_dim]          # [obs_dim, H]
    w1_act = w1[obs_dim:]          # [act_dim, H]

    # Lane-dense output: pad layer-3 params to 128 output columns.
    w3_pad = jnp.pad(w3, ((0, 0), (0, _OUT_W - w3.shape[1])))   # [H, 128]
    b3_pad = jnp.pad(b3, ((0, 0), (0, _OUT_W - b3.shape[1])))   # [1, 128]

    # Batch tiling: multiple of 8 sublanes; pad the ragged tail with zeros.
    tb = _round_up(min(block_b, _round_up(B, 8)), 8)
    b_pad = _round_up(B, tb)
    if b_pad != B:
        obs = jnp.pad(obs, ((0, b_pad - B), (0, 0)))
        action = jnp.pad(action, ((0, b_pad - B), (0, 0)))
    grid = (b_pad // tb,)

    def batch_spec(width):
        return pl.BlockSpec((tb, width), lambda i: (i, 0))

    def const_spec(shape):
        return pl.BlockSpec(shape, lambda i: (0, 0))

    out = pl.pallas_call(
        qfunction_kernel,
        out_shape=jax.ShapeDtypeStruct((b_pad, _OUT_W), jnp.float32),
        grid_spec=pl.GridSpec(
            grid=grid,
            in_specs=[
                batch_spec(obs_dim),          # obs tile   (double-buffered)
                batch_spec(act_dim),          # action tile (double-buffered)
                const_spec((obs_dim, H)),     # W1[:obs_dim]  (VMEM-resident)
                const_spec((act_dim, H)),     # W1[obs_dim:]  (VMEM-resident)
                const_spec((1, H)),           # b1
                const_spec((H, H)),           # W2
                const_spec((1, H)),           # b2
                const_spec((H, _OUT_W)),      # W3 padded to 128 lanes
                const_spec((1, _OUT_W)),      # b3 padded to 128 lanes
            ],
            out_specs=batch_spec(_OUT_W),
        ),
        compiler_params=pltpu.CompilerParams(
            dimension_semantics=("parallel",),   # free ~2x on v7x megacore
        ),
    )(obs, action, w1_obs, w1_act, b1, w2, b2, w3_pad, b3_pad)

    return out[:B, :1]


def init_params(key, obs_dim, action_dim, hidden_dim):
    """Deterministic synthetic parameters (PyTorch Linear-style uniform init).

    Weights are stored transposed: [in_features, out_features].
    """
    d_in = obs_dim + action_dim
    ks = jax.random.split(key, 6)

    def uinit(k, shape, fan_in):
        bound = 1.0 / jnp.sqrt(fan_in)
        return jax.random.uniform(k, shape, jnp.float32, -bound, bound)

    w1 = uinit(ks[0], (d_in, hidden_dim), d_in)
    b1 = uinit(ks[1], (1, hidden_dim), d_in)
    w2 = uinit(ks[2], (hidden_dim, hidden_dim), hidden_dim)
    b2 = uinit(ks[3], (1, hidden_dim), hidden_dim)
    w3 = uinit(ks[4], (hidden_dim, 1), hidden_dim)
    b3 = uinit(ks[5], (1, 1), hidden_dim)
    return (w1, b1, w2, b2, w3, b3)


def reference_forward(obs, action, params):
    """Plain-JAX reference matching the PyTorch module semantics."""
    w1, b1, w2, b2, w3, b3 = params
    x = jnp.concatenate([obs, action], axis=1)
    h1 = jnp.maximum(x @ w1 + b1, 0.0)
    h2 = jnp.maximum(h1 @ w2 + b2, 0.0)
    return h2 @ w3 + b3


if __name__ == "__main__":
    obs_dim, action_dim, hidden_dim, batch = 24, 8, 32, 8

    key = jax.random.PRNGKey(0)
    k_obs, k_act, k_params = jax.random.split(key, 3)

    obs = jax.random.normal(k_obs, (batch, obs_dim), jnp.float32)
    action = jax.random.normal(k_act, (batch, action_dim), jnp.float32)
    params = init_params(k_params, obs_dim, action_dim, hidden_dim)

    q = qfunction_forward(obs, action, params)
    q = jax.block_until_ready(q)

    q_ref = reference_forward(obs, action, params)
    assert q.shape == (batch, 1), q.shape
    assert jnp.allclose(q, q_ref, atol=1e-5, rtol=1e-5)

    # Also exercise a batch that is not a multiple of the tile (ragged tail path).
    batch2 = 13
    obs2 = jax.random.normal(jax.random.PRNGKey(1), (batch2, obs_dim), jnp.float32)
    act2 = jax.random.normal(jax.random.PRNGKey(2), (batch2, action_dim), jnp.float32)
    q2 = jax.block_until_ready(qfunction_forward(obs2, act2, params))
    q2_ref = reference_forward(obs2, act2, params)
    assert q2.shape == (batch2, 1), q2.shape
    assert jnp.allclose(q2, q2_ref, atol=1e-5, rtol=1e-5)

    print("KERNEL_OK")
</pallas_src>

<mosaic_0001>
module attributes {stable_mosaic.version = 11 : i64} {
  func.func @qfunction_kernel(%arg0: i32, %arg1: memref<8x24xf32, #tpu.memory_space<vmem>>, %arg2: memref<8x8xf32, #tpu.memory_space<vmem>>, %arg3: memref<24x32xf32, #tpu.memory_space<vmem>>, %arg4: memref<8x32xf32, #tpu.memory_space<vmem>>, %arg5: memref<1x32xf32, #tpu.memory_space<vmem>>, %arg6: memref<32x32xf32, #tpu.memory_space<vmem>>, %arg7: memref<1x32xf32, #tpu.memory_space<vmem>>, %arg8: memref<32x128xf32, #tpu.memory_space<vmem>>, %arg9: memref<1x128xf32, #tpu.memory_space<vmem>>, %arg10: memref<8x128xf32, #tpu.memory_space<vmem>>) attributes {dimension_semantics = [#tpu.dimension_semantics<parallel>], iteration_bounds = array<i64: 1>, scalar_prefetch = 0 : i64, scratch_operands = 0 : i64, tpu.core_type = #tpu.core_type<tc>, window_params = [{transform_indices = @transform_0, window_bounds = array<i64: 8, 24>}, {transform_indices = @transform_1, window_bounds = array<i64: 8, 8>}, {pipeline_mode = #tpu.pipeline_mode<synchronous>, transform_indices = @transform_2, window_bounds = array<i64: 24, 32>}, {pipeline_mode = #tpu.pipeline_mode<synchronous>, transform_indices = @transform_3, window_bounds = array<i64: 8, 32>}, {pipeline_mode = #tpu.pipeline_mode<synchronous>, transform_indices = @transform_4, window_bounds = array<i64: 1, 32>}, {pipeline_mode = #tpu.pipeline_mode<synchronous>, transform_indices = @transform_5, window_bounds = array<i64: 32, 32>}, {pipeline_mode = #tpu.pipeline_mode<synchronous>, transform_indices = @transform_6, window_bounds = array<i64: 1, 32>}, {pipeline_mode = #tpu.pipeline_mode<synchronous>, transform_indices = @transform_7, window_bounds = array<i64: 32, 128>}, {pipeline_mode = #tpu.pipeline_mode<synchronous>, transform_indices = @transform_8, window_bounds = array<i64: 1, 128>}, {transform_indices = @transform_9, window_bounds = array<i64: 8, 128>}]} {
    %c0 = arith.constant 0 : index
    %c0_0 = arith.constant 0 : index
    %0 = vector.load %arg1[%c0, %c0_0] : memref<8x24xf32, #tpu.memory_space<vmem>>, vector<8x24xf32>
    %c0_1 = arith.constant 0 : index
    %c0_2 = arith.constant 0 : index
    %1 = vector.load %arg2[%c0_1, %c0_2] : memref<8x8xf32, #tpu.memory_space<vmem>>, vector<8x8xf32>
    %c0_3 = arith.constant 0 : index
    %c0_4 = arith.constant 0 : index
    %2 = vector.load %arg3[%c0_3, %c0_4] : memref<24x32xf32, #tpu.memory_space<vmem>>, vector<24x32xf32>
    %cst = arith.constant dense<0.000000e+00> : vector<8x32xf32>
    %3 = tpu.matmul %0, %2, %cst {dimension_numbers = #tpu.dot_dimension_numbers<[1], [0], [0], [1], [0, 0, 1, 1], [], []>} : vector<8x24xf32>, vector<24x32xf32>, vector<8x32xf32> -> vector<8x32xf32>
    %c0_5 = arith.constant 0 : index
    %c0_6 = arith.constant 0 : index
    %4 = vector.load %arg4[%c0_5, %c0_6] : memref<8x32xf32, #tpu.memory_space<vmem>>, vector<8x32xf32>
    %cst_7 = arith.constant dense<0.000000e+00> : vector<8x32xf32>
    %5 = tpu.matmul %1, %4, %cst_7 {dimension_numbers = #tpu.dot_dimension_numbers<[1], [0], [0], [1], [0, 0, 1, 1], [], []>} : vector<8x8xf32>, vector<8x32xf32>, vector<8x32xf32> -> vector<8x32xf32>
    %6 = arith.addf %3, %5 : vector<8x32xf32>
    %c0_8 = arith.constant 0 : index
    %c0_9 = arith.constant 0 : index
    %7 = vector.load %arg5[%c0_8, %c0_9] : memref<1x32xf32, #tpu.memory_space<vmem>>, vector<1x32xf32>
    %8 = vector.broadcast %7 : vector<1x32xf32> to vector<8x32xf32>
    %9 = arith.addf %6, %8 : vector<8x32xf32>
    %cst_10 = arith.constant 0.000000e+00 : f32
    %10 = vector.broadcast %cst_10 : f32 to vector<8x32xf32>
    %11 = arith.maximumf %9, %10 : vector<8x32xf32>
    %c0_11 = arith.constant 0 : index
    %c0_12 = arith.constant 0 : index
    %12 = vector.load %arg6[%c0_11, %c0_12] : memref<32x32xf32, #tpu.memory_space<vmem>>, vector<32x32xf32>
    %cst_13 = arith.constant dense<0.000000e+00> : vector<8x32xf32>
    %13 = tpu.matmul %11, %12, %cst_13 {dimension_numbers = #tpu.dot_dimension_numbers<[1], [0], [0], [1], [0, 0, 1, 1], [], []>} : vector<8x32xf32>, vector<32x32xf32>, vector<8x32xf32> -> vector<8x32xf32>
    %c0_14 = arith.constant 0 : index
    %c0_15 = arith.constant 0 : index
    %14 = vector.load %arg7[%c0_14, %c0_15] : memref<1x32xf32, #tpu.memory_space<vmem>>, vector<1x32xf32>
    %15 = vector.broadcast %14 : vector<1x32xf32> to vector<8x32xf32>
    %16 = arith.addf %13, %15 : vector<8x32xf32>
    %cst_16 = arith.constant 0.000000e+00 : f32
    %17 = vector.broadcast %cst_16 : f32 to vector<8x32xf32>
    %18 = arith.maximumf %16, %17 : vector<8x32xf32>
    %c0_17 = arith.constant 0 : index
    %c0_18 = arith.constant 0 : index
    %19 = vector.load %arg8[%c0_17, %c0_18] : memref<32x128xf32, #tpu.memory_space<vmem>>, vector<32x128xf32>
    %cst_19 = arith.constant dense<0.000000e+00> : vector<8x128xf32>
    %20 = tpu.matmul %18, %19, %cst_19 {dimension_numbers = #tpu.dot_dimension_numbers<[1], [0], [0], [1], [0, 0, 1, 1], [], []>} : vector<8x32xf32>, vector<32x128xf32>, vector<8x128xf32> -> vector<8x128xf32>
    %c0_20 = arith.constant 0 : index
    %c0_21 = arith.constant 0 : index
    %21 = vector.load %arg9[%c0_20, %c0_21] : memref<1x128xf32, #tpu.memory_space<vmem>>, vector<1x128xf32>
    %22 = vector.broadcast %21 : vector<1x128xf32> to vector<8x128xf32>
    %23 = arith.addf %20, %22 : vector<8x128xf32>
    %c0_22 = arith.constant 0 : index
    %c0_23 = arith.constant 0 : index
    %24 = vector.load %arg10[%c0_22, %c0_23] : memref<8x128xf32, #tpu.memory_space<vmem>>, vector<8x128xf32>
    tpu.vector_store %arg10[%c0_22, %c0_23], %23 {strides = array<i32>} : memref<8x128xf32, #tpu.memory_space<vmem>>, vector<8x128xf32>,
    return
  }
  func.func @transform_0(%arg0: i32) -> (i32, i32) {
    %c0_i32 = arith.constant 0 : i32
    %c0_i32_0 = arith.constant 0 : i32
    return %arg0, %c0_i32 : i32, i32
  }
  func.func @transform_1(%arg0: i32) -> (i32, i32) {
    %c0_i32 = arith.constant 0 : i32
    %c0_i32_0 = arith.constant 0 : i32
    return %arg0, %c0_i32 : i32, i32
  }
  func.func @transform_2(%arg0: i32) -> (i32, i32) {
    %c0_i32 = arith.constant 0 : i32
    %c0_i32_0 = arith.constant 0 : i32
    %c0_i32_1 = arith.constant 0 : i32
    return %c0_i32, %c0_i32_0 : i32, i32
  }
  func.func @transform_3(%arg0: i32) -> (i32, i32) {
    %c0_i32 = arith.constant 0 : i32
    %c0_i32_0 = arith.constant 0 : i32
    %c0_i32_1 = arith.constant 0 : i32
    return %c0_i32, %c0_i32_0 : i32, i32
  }
  func.func @transform_4(%arg0: i32) -> (i32, i32) {
    %c0_i32 = arith.constant 0 : i32
    %c0_i32_0 = arith.constant 0 : i32
    %c0_i32_1 = arith.constant 0 : i32
    return %c0_i32, %c0_i32_0 : i32, i32
  }
  func.func @transform_5(%arg0: i32) -> (i32, i32) {
    %c0_i32 = arith.constant 0 : i32
    %c0_i32_0 = arith.constant 0 : i32
    %c0_i32_1 = arith.constant 0 : i32
    return %c0_i32, %c0_i32_0 : i32, i32
  }
  func.func @transform_6(%arg0: i32) -> (i32, i32) {
    %c0_i32 = arith.constant 0 : i32
    %c0_i32_0 = arith.constant 0 : i32
    %c0_i32_1 = arith.constant 0 : i32
    return %c0_i32, %c0_i32_0 : i32, i32
  }
  func.func @transform_7(%arg0: i32) -> (i32, i32) {
    %c0_i32 = arith.constant 0 : i32
    %c0_i32_0 = arith.constant 0 : i32
    %c0_i32_1 = arith.constant 0 : i32
    return %c0_i32, %c0_i32_0 : i32, i32
  }
  func.func @transform_8(%arg0: i32) -> (i32, i32) {
    %c0_i32 = arith.constant 0 : i32
    %c0_i32_0 = arith.constant 0 : i32
    %c0_i32_1 = arith.constant 0 : i32
    return %c0_i32, %c0_i32_0 : i32, i32
  }
  func.func @transform_9(%arg0: i32) -> (i32, i32) {
    %c0_i32 = arith.constant 0 : i32
    %c0_i32_0 = arith.constant 0 : i32
    return %arg0, %c0_i32 : i32, i32
  }
}

</mosaic_0001>

<bundles_post_ra>
// kernel: tpu_custom_call.1
= control target key start
LH: loop header
LB: loop body
LE: loop exit
PB: predicated region body
PF: predicated region fallthrough
CT: control target
= control target key end

     0   :  { %14 = vsyncpa [#allocation3], 0  ;;  %s831_s0 = inlined_call_operand.hbm [shape: f32[8,24], index: 0, kind: input, shape index: {}]   ;;  %s832_s1 = inlined_call_operand.hbm [shape: f32[8,8], index: 1, kind: input, shape index: {}]   ;;  %s833_s2 = inlined_call_operand.hbm [shape: f32[24,32], index: 2, kind: input, shape index: {}]   ;;  %s834_s3 = inlined_call_operand.vmem [shape: f32[8,32], index: 3, kind: input, shape index: {}]   ;;  %s835_s4 = inlined_call_operand.vmem [shape: f32[1,32], index: 4, kind: input, shape index: {}]   ;;  %s836_s5 = inlined_call_operand.hbm [shape: f32[32,32], index: 5, kind: input, shape index: {}]   ;;  %s837_s6 = inlined_call_operand.vmem [shape: f32[1,32], index: 6, kind: input, shape index: {}]   ;;  %s838_s7 = inlined_call_operand.hbm [shape: f32[32,128], index: 7, kind: input, shape index: {}]   ;;  %s839_s8 = inlined_call_operand.vmem [shape: f32[1,128], index: 8, kind: input, shape index: {}]   ;;  %s840_s9 = inlined_call_operand.hbm [shape: f32[8,128], index: 9, kind: output, shape index: {}]  }
   0x1   :  { %15 = vsyncpa [#allocation6], 0 }
   0x2   :  { %16 = vsyncpa [#allocation9], 0 }
   0x3   :  { %17 = vsyncpa [#allocation4], 0  ;;  %s673_s30 = smov [#allocation5]   ;;  %s533_s13 = scalar_lea.hbm %s832_s1, 128 }
   0x4   :  { %s34_s10 = sshll.u32 %s673_s30, 4  ;;  %p534_p0 = scmp.ne.s32.totalorder %s832_s1, %s533_s13  ;;  %s35_s10 = int_to_ptr.vmem [resolvable:$true] %s34_s10 }
   0x5   :  { %p537_p1 = scmp.lt.u32.totalorder %s533_s13, %s832_s1 }
   0x7   :  { %p539_p2 = pnand %p537_p1, %p534_p0 }
   0x9   :  { %542 = shalt.err (!%p539_p2)
}
   0xa   :  { %s543_s18 = scalar_lea.vmem %s35_s10, 128  ;;  %p548_p4 = scmp.lt.s32.totalorder %s35_s10, %s35_s10 }
   0xb   :  { %p544_p3 = scmp.ne.s32.totalorder %s35_s10, %s543_s18  ;;  %p549_p5 = scmp.lt.s32.totalorder %s543_s18, %s543_s18 }
   0xd   :  { %p550_p6 = por %p549_p5, %p548_p4 }
   0xf   :  { %p551_p7 = pnand %p550_p6, %p544_p3 }
  0x11   :  { %554 = shalt.err (!%p551_p7)
}
  0x12   :  { %37 = dma.hbm_to_vmem [thread:$0]  %s832_s1, 128, %s35_s10, [#allocation6]  }
  0x13   :  { %s674_s21 = smov [#allocation8]   ;;  %s675_s23 = smov [#allocation2]  }
  0x14   :  { %s59_s22 = sshll.u32 %s674_s21, 4  ;;  %s24_s24 = sshll.u32 %s675_s23, 4  ;;  %s60_s22 = int_to_ptr.vmem [resolvable:$true] %s59_s22  ;;  %s25_s24 = int_to_ptr.vmem [resolvable:$true] %s24_s24 }
  0x15   :  { %s555_s27 = scalar_lea.hbm %s836_s5, 512 }
  0x16   :  { %p556_p8 = scmp.ne.s32.totalorder %s836_s5, %s555_s27  ;;  %p559_p9 = scmp.lt.u32.totalorder %s555_s27, %s836_s5 }
  0x18   :  { %p561_p10 = pnand %p559_p9, %p556_p8 }
  0x1a   :  { %564 = shalt.err (!%p561_p10)
}
  0x1b   :  { %s565_s1 = scalar_lea.vmem %s60_s22, 512  ;;  %p570_p12 = scmp.lt.s32.totalorder %s60_s22, %s60_s22 }
  0x1c   :  { %p566_p11 = scmp.ne.s32.totalorder %s60_s22, %s565_s1  ;;  %p571_p13 = scmp.lt.s32.totalorder %s565_s1, %s565_s1 }
  0x1e   :  { %p572_p0 = por %p571_p13, %p570_p12 }
  0x20   :  { %p573_p1 = pnand %p572_p0, %p566_p11 }
  0x22   :  { %576 = shalt.err (!%p573_p1)
}
  0x23   :  { %s676_s10 = smov 128   ;;  %s677_s12 = smov 8  }
  0x24   :  { %65 = dma.hbm_to_vmem [thread:$0]  %s836_s5, 512, %s60_s22, [#allocation9], %s676_s10, %s676_s10, %s677_s12  }
  0x25   :  { %s577_s17 = scalar_lea.hbm %s831_s0, 128 }
  0x26   :  { %p578_p2 = scmp.ne.s32.totalorder %s831_s0, %s577_s17  ;;  %p581_p3 = scmp.lt.u32.totalorder %s577_s17, %s831_s0 }
  0x28   :  { %p583_p4 = pnand %p581_p3, %p578_p2 }
  0x2a   :  { %586 = shalt.err (!%p583_p4)
}
  0x2b   :  { %s587_s23 = scalar_lea.vmem %s25_s24, 128  ;;  %p592_p6 = scmp.lt.s32.totalorder %s25_s24, %s25_s24 }
  0x2c   :  { %p588_p5 = scmp.ne.s32.totalorder %s25_s24, %s587_s23  ;;  %p593_p7 = scmp.lt.s32.totalorder %s587_s23, %s587_s23 }
  0x2e   :  { %p594_p8 = por %p593_p7, %p592_p6 }
  0x30   :  { %p595_p9 = pnand %p594_p8, %p588_p5 }
  0x32   :  { %598 = shalt.err (!%p595_p9)
}
  0x33   :  { %27 = dma.hbm_to_vmem [thread:$0]  %s831_s0, 128, %s25_s24, [#allocation3]  }
  0x34   :  { %s678_s25 = smov [#allocation7]   ;;  %s679_s27 = smov [#allocation10]  }
  0x35   :  { %s43_s26 = sshll.u32 %s678_s25, 4  ;;  %s73_s28 = sshll.u32 %s679_s27, 4  ;;  %s44_s26 = int_to_ptr.vmem [resolvable:$true] %s43_s26  ;;  %s74_s28 = int_to_ptr.vmem [resolvable:$true] %s73_s28 }
  0x36   :  { %s599_s11 = scalar_lea.hbm %s833_s2, 384 }
  0x37   :  { %p600_p10 = scmp.ne.s32.totalorder %s833_s2, %s599_s11  ;;  %p603_p11 = scmp.lt.u32.totalorder %s599_s11, %s833_s2 }
  0x39   :  { %p605_p12 = pnand %p603_p11, %p600_p10 }
  0x3b   :  { %608 = shalt.err (!%p605_p12)
}
  0x3c   :  { %s609_s0 = scalar_lea.vmem %s44_s26, 384  ;;  %p614_p0 = scmp.lt.s32.totalorder %s44_s26, %s44_s26 }
  0x3d   :  { %p610_p13 = scmp.ne.s32.totalorder %s44_s26, %s609_s0  ;;  %p615_p1 = scmp.lt.s32.totalorder %s609_s0, %s609_s0 }
  0x3f   :  { %p616_p2 = por %p615_p1, %p614_p0 }
  0x41   :  { %p617_p3 = pnand %p616_p2, %p610_p13 }
  0x43   :  { %620 = shalt.err (!%p617_p3)
}
  0x44   :  { %49 = dma.hbm_to_vmem [thread:$0]  %s833_s2, 384, %s44_s26, [#allocation6], %s676_s10, %s676_s10, %s677_s12  }
  0x45   :  { %s621_s19 = scalar_lea.hbm %s838_s7, 512 }
  0x46   :  { %p622_p4 = scmp.ne.s32.totalorder %s838_s7, %s621_s19  ;;  %p625_p5 = scmp.lt.u32.totalorder %s621_s19, %s838_s7 }
  0x48   :  { %p627_p6 = pnand %p625_p5, %p622_p4 }
  0x4a   :  { %630 = shalt.err (!%p627_p6)
}
  0x4b   :  { %s631_s22 = scalar_lea.vmem %s74_s28, 512  ;;  %p636_p8 = scmp.lt.s32.totalorder %s74_s28, %s74_s28 }
  0x4c   :  { %p632_p7 = scmp.ne.s32.totalorder %s74_s28, %s631_s22  ;;  %p637_p9 = scmp.lt.s32.totalorder %s631_s22, %s631_s22 }
  0x4e   :  { %p638_p10 = por %p637_p9, %p636_p8 }
  0x50   :  { %p639_p11 = pnand %p638_p10, %p632_p7 }
  0x52   :  { %642 = shalt.err (!%p639_p11)
}
  0x53   :  { %79 = dma.hbm_to_vmem [thread:$0]  %s838_s7, 512, %s74_s28, [#allocation9], %s676_s10, %s676_s10, %s677_s12  }
  0x54   :  { %665 = dma.done.wait [#allocation3], 128  }
  0x55   :  { %666 = vsyncadd [#allocation3], 4294967168 }
  0x56   :  { %667 = dma.done.wait [#allocation6], 512  }
  0x57   :  { %668 = vsyncadd [#allocation6], 4294966784 }
  0x58   :  { %669 = dma.done.wait [#allocation9], 1024  }
  0x59   :  { %670 = vsyncadd [#allocation9], 4294966272  ;;  %v680_v0 = vmov 0.0|0.0   ;;  %v681_v1 = vmov 0.0   ;;  %vm682_vm0 = vmmov 0   ;;  %vm103_vm1 = vcmask 64512  }
  0x5a   :  { %507 = vmatprep.subr.bf16.mxu1 %v680_v0  ;;  %471 = vmatprep.subr.mxu0 %v681_v1  ;;  %v99_v2 = vld [vmem:[#allocation7] sm:$0xff]  ;;  %v100_v3 = vld [vmem:[#allocation7 + $0x8] sm:$0xff]  ;;  %v102_v4 = vld [vmem:[%s834_s3] sm:$0xff]  ;;  %vm177_vm2 = vcmask 195584   ;;  %vm271_vm3 = vcmask 261120   ;;  %s683_s29 = smov [#allocation11]  }
  0x5b   :  { %473 = vmatprep.mubr.msk.f32.mxu0 %vm682_vm0, %v681_v1  ;;  %482 = vmatprep.mubr.msk.f32.mxu1 %vm682_vm0, %v681_v1  ;;  %v508_v5 = vpack.c.bf16 %v100_v3, %v99_v2  ;;  %v98_v6 = vld [vmem:[#allocation5] sm:$0xff]  ;;  %v101_v7 = vld [vmem:[#allocation7 + $0x10] sm:$0xff]  ;;  %v261_v10 = vld [vmem:[#allocation8 + $0x8] sm:$0xff]  ;;  %s437_s30 = sshll.u32 %s683_s29, 4  ;;  %s438_s30 = int_to_ptr.vmem [resolvable:$true] %s437_s30 }
  0x5c   :  { %472 = vmatpush3.msra.mxu0 %v102_v4  ;;  %v97_v8 = vld [vmem:[#allocation2] sm:$0xff]  ;;  %v260_v9 = vld [vmem:[#allocation8] sm:$0xff]  ;;  %v262_v12 = vld [vmem:[#allocation8 + $0x10] sm:$0xff]  ;;  %s643_s11 = scalar_lea.vmem %s438_s30, 128  ;;  %p648_p13 = scmp.lt.s32.totalorder %s438_s30, %s438_s30 }
  0x5d   :  { %474 = vmatmul.mubr.msk.f32.vlgmr.msra.gmra.mrb[0].mxu0 %vm103_vm1, %v98_v6  ;;  %510 = vmatprep.subr.bf16.mxu0 %v680_v0  ;;  %v511_v11 = vpack.c.bf16 %v261_v10, %v260_v9  ;;  %v263_v13 = vld [vmem:[#allocation8 + $0x18] sm:$0xff]  ;;  %v346_v15 = vld [vmem:[#allocation10] sm:$0xff]  ;;  %v347_v16 = vld [vmem:[#allocation10 + $0x8] sm:$0xff]  ;;  %p644_p12 = scmp.ne.s32.totalorder %s438_s30, %s643_s11  ;;  %p649_p0 = scmp.lt.s32.totalorder %s643_s11, %s643_s11 }
  0x5e   :  { %509 = vmatpush3.bf16.msra.mxu1 %v508_v5  ;;  %493 = vmatprep.mubr.msk.f32.mxu0 %vm682_vm0, %v681_v1  ;;  %v514_v14 = vpack.c.bf16 %v263_v13, %v262_v12  ;;  %v517_v17 = vpack.c.bf16 %v347_v16, %v346_v15  ;;  %v450_v21 = vld [vmem:[%s835_s4] ss:$0 sm:$0xff]  ;;  %v348_v26 = vld [vmem:[#allocation10 + $0x10] sm:$0xff] }
  0x5f   :  { %480 = vmatprep.subr.mxu1 %v681_v1  ;;  %512 = vmatpush3.bf16.msra.mxu0 %v511_v11  ;;  %v349_v27 = vld [vmem:[#allocation10 + $0x18] sm:$0xff]  ;;  %p650_p1 = por %p649_p0, %p648_p13 }
  0x60   :  { %513 = vmatprep.subr.bf16.mxu0 %v680_v0  ;;  %v520_v28 = vpack.c.bf16 %v349_v27, %v348_v26  ;;  %v451_v29 = vld [vmem:[%s837_s6] ss:$0 sm:$0xff] }
  0x61   :  { %v453_v34 = vld [vmem:[%s839_s8] ss:$0 sm:$0xff]  ;;  %p651_p2 = pnand %p650_p1, %p644_p12 }
  0x62   :  { %481 = vmatpush3.msra.mxu1 %v101_v7 }
  0x63   :  { %483 = vmatmul.mubr.msk.f32.vlgmr.msra.gmra.mrb[0].mxu1 %vm177_vm2, %v97_v8  ;;  %516 = vmatprep.subr.bf16.mxu1 %v680_v0 }
  0x64   :  { %504 = vmatprep.mubr.msk.f32.mxu1 %vm682_vm0, %v681_v1  ;;  %515 = vmatpush3.bf16.msra.mxu0 %v514_v14 }
  0x65   :  { %518 = vmatpush3.bf16.msra.mxu1 %v517_v17 }
  0x66   :  { %519 = vmatprep.subr.bf16.mxu1 %v680_v0 }
  0x69   :  { %521 = vmatpush3.bf16.msra.mxu1 %v520_v28 }
 0x130   :  { %v173_v18 = vpop.f32.mrb[0].mxu0 }
 0x131   :  { %v475_v19 = vpop.f32.mrb[1].mxu0 }
 0x136   :  { %v247_v20 = vpop.f32.mrb[0].mxu1 }
 0x137   :  { %v248_v22 = vadd.f32 %v247_v20, %v173_v18  ;;  %v484_v23 = vpop.f32.mrb[1].mxu1 }
 0x139   :  { %v258_v24 = vadd.f32 %v450_v21, %v248_v22 }
 0x13b   :  { %v259_v25 = vmax.f32 %v258_v24, 0.0 }
 0x13d   :  { %494 = vmatmul.mubr.msk.f32.vlgmr.msra.gmra.mrb[2].mxu0 %vm271_vm3, %v259_v25 }
 0x210   :  { %v341_v30 = vpop.f32.mrb[2].mxu0 }
 0x211   :  { %v342_v31 = vadd.f32 %v451_v29, %v341_v30  ;;  %v495_v32 = vpop.f32.mrb[3].mxu0 }
 0x213   :  { %v345_v33 = vmax.f32 %v342_v31, 0.0 }
 0x215   :  { %505 = vmatmul.mubr.msk.f32.vlgmr.msra.gmra.mrb[2].mxu1 %vm271_vm3, %v345_v33 }
 0x2e8   :  { %v426_v35 = vpop.f32.mrb[2].mxu1 }
 0x2e9   :  { %v427_v36 = vadd.f32 %v453_v34, %v426_v35  ;;  %v506_v37 = vpop.f32.mrb[3].mxu1 }
 0x2eb   :  { %430 = vst [vmem:[#allocation11] sm:$0xff] %v427_v36 }
 0x2ec   :  { %654 = shalt.err (!%p651_p2)
}
 0x2ed   :  { %s655_s13 = scalar_lea.hbm %s840_s9, 128 }
 0x2ee   :  { %p656_p3 = scmp.ne.s32.totalorder %s840_s9, %s655_s13  ;;  %p659_p4 = scmp.lt.u32.totalorder %s655_s13, %s840_s9 }
 0x2f0   :  { %p661_p5 = pnand %p659_p4, %p656_p3 }
 0x2f2   :  { %664 = shalt.err (!%p661_p5)
}
 0x2f3   :  { %440 = dma.vmem_to_hbm [thread:$0]  %s438_s30, 128, %s840_s9, [#allocation4]  }
 0x2f4   :  { %671 = dma.done.wait [#allocation4], 128  }
 0x2f5   :  { %672 = vsyncadd [#allocation4], 4294967168 }
 0x2f6   :  { %444 = vsyncpa [#allocation3], 1 }
 0x2f7   :  { %445 = vsyncpa [#allocation6], 1 }
 0x2f8   :  { %446 = vsyncpa [#allocation9], 1 }
 0x2f9   :  { %447 = vsyncpa [#allocation4], 1 }

</bundles_post_ra>
